<compile_context>
chip_gen: v7x
topology: tpu7x:2x2x1
jax: 0.10.0
libtpu: 0.0.40
codegen_flags: <defaults>
</compile_context>

<pallas_src>
import jax
import jax.numpy as jnp
from jax.experimental import pallas as pl
from jax.experimental.pallas import tpu as pltpu


_MIN_GRID_STEPS = 4  # keep both v7x TensorCores fed + allow double-buffer overlap


def _local_affine_kernel(p_ref, x_ref, o_ref):
    # p_ref: (1, 12, TN); rows 0..8 = A with row order 3*j + i
    #        (p[3*j + i, n] == A[b, n, i, j]); rows 9..11 = bias.
    # x_ref / o_ref: (1, 3, TN)
    p = p_ref[0].astype(jnp.float32)     # (12, TN)
    x = x_ref[0].astype(jnp.float32)     # (3, TN)
    # out[i, :] = sum_j A[i, j] * x[j] + b[i]  -- pure VPU FMAs, f32 accumulate.
    out = (p[0:3, :] * x[0:1, :]
           + p[3:6, :] * x[1:2, :]
           + p[6:9, :] * x[2:3, :]
           + p[9:12, :])
    o_ref[0] = out.astype(o_ref.dtype)


def _pick_lane_tile(n, preferred, batch_size):
    """Lane tile: <= preferred, a multiple of 128 (or the full extent), and
    small enough that the grid has >= _MIN_GRID_STEPS total steps when N
    allows (megacore sharding on v7x + pipeline overlap at small B)."""
    want_tiles = max(1, -(-_MIN_GRID_STEPS // max(1, batch_size)))   # cdiv
    cap = max(128, (preferred // 128) * 128)
    if want_tiles > 1:
        per_tile = max(128, (n // want_tiles) // 128 * 128)
        cap = min(cap, per_tile)
    if n <= cap:
        return n          # full-extent block is always legal
    return cap            # multiple of 128; tail block is masked


def params_to_lane_major(A, b, dtype=None):
    """One-time re-layout + packing of the trainable parameters (do at init).

    A: (B, N, 3, 3), b: (B, N, 3, 1) ->
    params_lane: (B, 12, N) with rows 0..8 = A (row 3*j + i == A[..., i, j]),
                 rows 9..11 = b.
    """
    B, N = A.shape[0], A.shape[1]
    a_lane = jnp.transpose(A, (0, 3, 2, 1)).reshape(B, 9, N)   # (B, 9, N)
    b_lane = jnp.transpose(b[..., 0], (0, 2, 1))               # (B, 3, N)
    params_lane = jnp.concatenate([a_lane, b_lane], axis=1)    # (B, 12, N)
    if dtype is not None:
        params_lane = params_lane.astype(dtype)
    return params_lane


def local_affine_forward_lane_major(params_lane, x_lane, *, tn=32768):
    """Lane-major forward (no wrapper transposes).

    params_lane: (B, 12, N)  -- packed A (rows 0..8) and b (rows 9..11)
    x_lane:      (B, 3, N)
    returns out_lane: (B, 3, N)
    """
    B, rows, N = params_lane.shape
    assert rows == 12, "params_lane must be (B, 12, N)"
    tile = _pick_lane_tile(N, tn, B)
    grid = (B, pl.cdiv(N, tile))

    # ~21 flops/point (9 mul + 9 add + 3 bias add); bytes = params + x + out.
    bytes_accessed = int(params_lane.size * params_lane.dtype.itemsize
                         + 2 * x_lane.size * x_lane.dtype.itemsize)
    cost = pl.CostEstimate(flops=21 * B * N, transcendentals=0,
                           bytes_accessed=bytes_accessed)

    # Conservative double-buffered, sublane-padded VMEM footprint:
    #   params 12->16 rows, x 3->8, out 3->8  => 32 rows * 4 B * tile * 2 bufs.
    footprint = 2 * 32 * 4 * tile
    vmem_limit = int(min(max(footprint + (4 << 20), 32 << 20), 48 << 20))

    return pl.pallas_call(
        _local_affine_kernel,
        out_shape=jax.ShapeDtypeStruct((B, 3, N), x_lane.dtype),
        grid_spec=pltpu.PrefetchScalarGridSpec(
            num_scalar_prefetch=0,
            grid=grid,
            in_specs=[
                pl.BlockSpec((1, 12, tile), lambda bi, ni: (bi, 0, ni)),
                pl.BlockSpec((1, 3, tile), lambda bi, ni: (bi, 0, ni)),
            ],
            out_specs=pl.BlockSpec((1, 3, tile), lambda bi, ni: (bi, 0, ni)),
        ),
        compiler_params=pltpu.CompilerParams(
            dimension_semantics=("parallel", "parallel"),
            vmem_limit_bytes=vmem_limit),
        cost_estimate=cost,
    )(params_lane, x_lane)


def local_affine_forward(x, A, b, *, tn=32768):
    """PyTorch-layout compatibility wrapper (parity checks only).

    x: (B, N, 3), A: (B, N, 3, 3), b: (B, N, 3, 1) -> out: (B, N, 3)
    In production keep params packed lane-major (params_to_lane_major at init)
    and activations lane-major end-to-end, then call
    local_affine_forward_lane_major directly — these (B,N,3)<->(B,3,N)
    transposes would otherwise dominate wall-clock.
    """
    params_lane = params_to_lane_major(A, b)
    x_lane = jnp.transpose(x, (0, 2, 1))                      # (B, 3, N)
    out_lane = local_affine_forward_lane_major(params_lane, x_lane, tn=tn)
    return jnp.transpose(out_lane, (0, 2, 1))                 # (B, N, 3)


# TODO(synk): stiffness() (edge-indexed gather of cat(A, b) + squared diff) is
# only used when return_stiff=True and is left out of the Pallas path.


if __name__ == "__main__":
    key = jax.random.PRNGKey(0)
    kx, ka, kb, kx2, ka2, kb2 = jax.random.split(key, 6)

    # ---- Test 1: small shapes, f32, lane-major production path -------------
    B, N = 2, 256
    # Parameter init per LocalAffine.__init__ (identity A, zero b) plus a small
    # deterministic perturbation so the kernel math is exercised.
    A = jnp.broadcast_to(jnp.eye(3, dtype=jnp.float32), (B, N, 3, 3))
    A = A + 0.01 * jax.random.normal(ka, (B, N, 3, 3), dtype=jnp.float32)
    b = 0.01 * jax.random.normal(kb, (B, N, 3, 1), dtype=jnp.float32)
    x = jax.random.normal(kx, (B, N, 3), dtype=jnp.float32)

    params_lane = params_to_lane_major(A, b)                  # one-time pack
    x_lane = jnp.transpose(x, (0, 2, 1))
    out_lane = jax.block_until_ready(
        local_affine_forward_lane_major(params_lane, x_lane))
    out = jnp.transpose(out_lane, (0, 2, 1))

    ref = jnp.einsum("bnij,bnj->bni", A, x) + b[..., 0]
    assert out.shape == (B, N, 3)
    assert jnp.allclose(out, ref, atol=1e-5, rtol=1e-5)

    # Compat wrapper gives the same result.
    out_compat = jax.block_until_ready(local_affine_forward(x, A, b))
    assert jnp.allclose(out_compat, ref, atol=1e-5, rtol=1e-5)

    # ---- Test 2: N not divisible by the tile (cdiv grid + masked tail) -----
    B2, N2 = 2, 320
    A2 = jnp.broadcast_to(jnp.eye(3, dtype=jnp.float32), (B2, N2, 3, 3))
    A2 = A2 + 0.01 * jax.random.normal(ka2, (B2, N2, 3, 3), dtype=jnp.float32)
    b2 = 0.01 * jax.random.normal(kb2, (B2, N2, 3, 1), dtype=jnp.float32)
    x2 = jax.random.normal(kx2, (B2, N2, 3), dtype=jnp.float32)

    out2 = jax.block_until_ready(local_affine_forward(x2, A2, b2, tn=128))
    ref2 = jnp.einsum("bnij,bnj->bni", A2, x2) + b2[..., 0]
    assert out2.shape == (B2, N2, 3)
    assert jnp.allclose(out2, ref2, atol=1e-5, rtol=1e-5)

    # ---- Test 3: bf16 storage (bandwidth saver), f32 in-kernel accumulate --
    params_bf16 = params_to_lane_major(A, b, dtype=jnp.bfloat16)
    x_bf16 = x_lane.astype(jnp.bfloat16)
    out_bf16 = jax.block_until_ready(
        local_affine_forward_lane_major(params_bf16, x_bf16))
    out_bf16 = jnp.transpose(out_bf16, (0, 2, 1)).astype(jnp.float32)
    assert jnp.allclose(out_bf16, ref, atol=3e-2, rtol=3e-2)

    print("KERNEL_OK")
</pallas_src>

<mosaic_0001>
module attributes {stable_mosaic.version = 11 : i64} {
  func.func @_local_affine_kernel(%arg0: i32, %arg1: i32, %arg2: memref<1x12x128xf32, #tpu.memory_space<vmem>>, %arg3: memref<1x3x128xf32, #tpu.memory_space<vmem>>, %arg4: memref<1x3x128xf32, #tpu.memory_space<vmem>>) attributes {dimension_semantics = [#tpu.dimension_semantics<parallel>, #tpu.dimension_semantics<parallel>], iteration_bounds = array<i64: 2, 2>, scalar_prefetch = 0 : i64, scratch_operands = 0 : i64, tpu.core_type = #tpu.core_type<tc>, window_params = [{transform_indices = @transform_0, window_bounds = array<i64: 1, 12, 128>}, {transform_indices = @transform_1, window_bounds = array<i64: 1, 3, 128>}, {transform_indices = @transform_2, window_bounds = array<i64: 1, 3, 128>}]} {
    %c0 = arith.constant 0 : index
    %c0_0 = arith.constant 0 : index
    %c0_1 = arith.constant 0 : index
    %0 = vector.load %arg2[%c0, %c0_0, %c0_1] : memref<1x12x128xf32, #tpu.memory_space<vmem>>, vector<1x12x128xf32>
    %1 = vector.shape_cast %0 : vector<1x12x128xf32> to vector<12x128xf32>
    %c0_2 = arith.constant 0 : index
    %c0_3 = arith.constant 0 : index
    %c0_4 = arith.constant 0 : index
    %2 = vector.load %arg3[%c0_2, %c0_3, %c0_4] : memref<1x3x128xf32, #tpu.memory_space<vmem>>, vector<1x3x128xf32>
    %3 = vector.shape_cast %2 : vector<1x3x128xf32> to vector<3x128xf32>
    %4 = vector.extract_strided_slice %1 {offsets = [0, 0], sizes = [3, 128], strides = [1, 1]} : vector<12x128xf32> to vector<3x128xf32>
    %5 = vector.extract_strided_slice %3 {offsets = [0, 0], sizes = [1, 128], strides = [1, 1]} : vector<3x128xf32> to vector<1x128xf32>
    %6 = vector.broadcast %5 : vector<1x128xf32> to vector<3x128xf32>
    %7 = arith.mulf %4, %6 : vector<3x128xf32>
    %8 = vector.extract_strided_slice %1 {offsets = [3, 0], sizes = [3, 128], strides = [1, 1]} : vector<12x128xf32> to vector<3x128xf32>
    %9 = vector.extract_strided_slice %3 {offsets = [1, 0], sizes = [1, 128], strides = [1, 1]} : vector<3x128xf32> to vector<1x128xf32>
    %10 = vector.broadcast %9 : vector<1x128xf32> to vector<3x128xf32>
    %11 = arith.mulf %8, %10 : vector<3x128xf32>
    %12 = arith.addf %7, %11 : vector<3x128xf32>
    %13 = vector.extract_strided_slice %1 {offsets = [6, 0], sizes = [3, 128], strides = [1, 1]} : vector<12x128xf32> to vector<3x128xf32>
    %14 = vector.extract_strided_slice %3 {offsets = [2, 0], sizes = [1, 128], strides = [1, 1]} : vector<3x128xf32> to vector<1x128xf32>
    %15 = vector.broadcast %14 : vector<1x128xf32> to vector<3x128xf32>
    %16 = arith.mulf %13, %15 : vector<3x128xf32>
    %17 = arith.addf %12, %16 : vector<3x128xf32>
    %18 = vector.extract_strided_slice %1 {offsets = [9, 0], sizes = [3, 128], strides = [1, 1]} : vector<12x128xf32> to vector<3x128xf32>
    %19 = arith.addf %17, %18 : vector<3x128xf32>
    %c0_5 = arith.constant 0 : index
    %c0_6 = arith.constant 0 : index
    %c0_7 = arith.constant 0 : index
    %20 = vector.load %arg4[%c0_5, %c0_6, %c0_7] : memref<1x3x128xf32, #tpu.memory_space<vmem>>, vector<1x3x128xf32>
    %21 = vector.shape_cast %20 : vector<1x3x128xf32> to vector<3x128xf32>
    %22 = vector.shape_cast %19 : vector<3x128xf32> to vector<1x3x128xf32>
    tpu.vector_store %arg4[%c0_5, %c0_6, %c0_7], %22 {strides = array<i32>} : memref<1x3x128xf32, #tpu.memory_space<vmem>>, vector<1x3x128xf32>,
    return
  }
  func.func @transform_0(%arg0: i32, %arg1: i32) -> (i32, i32, i32) {
    %c0_i32 = arith.constant 0 : i32
    %c0_i32_0 = arith.constant 0 : i32
    return %arg0, %c0_i32, %arg1 : i32, i32, i32
  }
  func.func @transform_1(%arg0: i32, %arg1: i32) -> (i32, i32, i32) {
    %c0_i32 = arith.constant 0 : i32
    %c0_i32_0 = arith.constant 0 : i32
    return %arg0, %c0_i32, %arg1 : i32, i32, i32
  }
  func.func @transform_2(%arg0: i32, %arg1: i32) -> (i32, i32, i32) {
    %c0_i32 = arith.constant 0 : i32
    %c0_i32_0 = arith.constant 0 : i32
    return %arg0, %c0_i32, %arg1 : i32, i32, i32
  }
}

</mosaic_0001>

<bundles_post_ra>
// kernel: tpu_custom_call.1
= control target key start
LH: loop header
LB: loop body
LE: loop exit
PB: predicated region body
PF: predicated region fallthrough
CT: control target
= control target key end

     0   :  { %s521_s9 = smov 0   ;;  %s523_s10 = smov 0   ;;  %s615_s0 = inlined_call_operand.vmem [shape: f32[2,12,256], index: 0, kind: input, shape index: {}]   ;;  %s616_s1 = inlined_call_operand.vmem [shape: f32[2,3,256], index: 1, kind: input, shape index: {}]   ;;  %s617_s2 = inlined_call_operand.vmem [shape: f32[2,3,256], index: 2, kind: output, shape index: {}]  }
   0x1   :  { %s525_s11 = smov 0   ;;  %s527_s12 = smov 0  }
   0x2   :  { %s529_s13 = smov 0   ;;  %s531_s14 = smov 0  }
   0x3   :  { %s533_s15 = smov 0  }
   0x4 LB: > { %s21_s16 = sadd.s32 1, %s496_s13  ;;  %s24_s17 = sadd.s32 1, %s500_s14  ;;  %s504_s15 = sphi %s533_s15, %s12_s15   ;;  %s500_s14 = sphi %s531_s14, %s623_s14   ;;  %s496_s13 = sphi %s529_s13, %s622_s13   ;;  %s492_s12 = sphi %s527_s12, %s621_s12   ;;  %s488_s11 = sphi %s525_s11, %s620_s11   ;;  %s484_s10 = sphi %s523_s10, %s619_s10   ;;  %s480_s9 = sphi %s521_s9, %s618_s9  }
   0x5   : > { %p22_p0 = scmp.ge.s32.totalorder %s21_s16, 2  ;;  %p40_p1 = scmp.ne.s32.totalorder %s484_s10, %s480_s9 }
   0x6   : > { %p41_p2 = scmp.eq.s32.totalorder %s504_s15, 0  ;;  %s33_s21 = sadd.s32 1, %s484_s10 }
   0x7   : > { %s625_s16 = smov (%p22_p0, %s21_s16), 0  ;;  %s627_s17 = smov (!%p22_p0, %s24_s17), %s500_s14 }
   0x8   : > { %p42_p3 = por %p41_p2, %p40_p1  ;;  %p26_p4 = scmp.ge.s32.totalorder %s627_s17, 2 }
   0x9   : > { %s29_s18 = ssub.s32 %s496_s13, %s625_s16  ;;  %p382_p6 = scmp.ge.s32.totalorder %s504_s15, 4 }
   0xa   : > { %s629_s17 = smov (%p26_p4, %s627_s17), 0 }
   0xb   : > { %s28_s19 = ssub.s32 %s500_s14, %s629_s17  ;;  %122 = sbr.rel (%p382_p6) target bundleno = 25 (0x19), region = 16 }
   0xc   : > { %s30_s20 = sor.u32 %s29_s18, %s28_s19 }
   0xd   : > { %p31_p5 = scmp.eq.s32.totalorder %s30_s20, 0 }
   0xf   : > { %s572_s22 = scalar_select %p31_p5, %s484_s10, %s33_s21  }
  0x12   : > { %125 = sbr.rel (!%p42_p3) target bundleno = 25 (0x19), region = 20  ;;  %s127_s23 = sand.u32 (%p42_p3), 1, %s484_s10  }
  0x13   : > { %s384_s24 = sshll.u32 (%p42_p3), %s500_s14, 2  ;;  %s383_s25 = sshll.u32 (%p42_p3), %s127_s23, 4 }
  0x14   : > { %s131_s26 = sadd.s32 (%p42_p3), %s496_s13, %s384_s24  ;;  %s129_s3 = scalar_lea.vmem (%p42_p3), [#allocation2], %s383_s25 }
  0x15   : > { %s385_s27 = sshll.u32 (%p42_p3), %s131_s26, 3 }
  0x16   : > { %s133_s30 = scalar_lea.vmem (%p42_p3), %s615_s0, %s385_s27 }
  0x17   : > { %v163_v0 = vld [vmem:[%s133_s30] sm:$0xff] (%p42_p3)  ;;  %v165_v1 = vld [vmem:[%s133_s30 + $0x10] sm:$0xff] (%p42_p3) }
  0x18   : > { %164 = vst [vmem:[%s129_s3] sm:$0xff] (%p42_p3), %v163_v0  ;;  %166 = vst [vmem:[%s129_s3 + $0x8] sm:$0xff] (%p42_p3), %v165_v1 }
  0x19 PF: > { %p386_p7 = scmp.ge.s32.totalorder %s504_s15, 1  ;;  %p182_p8 = scmp.lt.s32.totalorder %s504_s15, 5 }
  0x1b   : > { %p183_p9 = pnand %p386_p7, %p182_p8 }
  0x1c   : > { %s189_s4 = sand.u32 (!%p183_p9), 1, %s480_s9   ;;  %p221_p10 = scmp.lt.s32.totalorder (!%p183_p9), %s492_s12, 1  ;;  %v240_v2 = vlaneseq (!%p183_p9)  ;;  %vm262_vm0 = vcmask (!%p183_p9), 1041408  }
  0x1d   : > { %186 = sbr.rel (%p183_p9) target bundleno = 55 (0x37), region = 62  ;;  %p223_p11 = scmp.lt.s32.totalorder (!%p183_p9), %s488_s11, 1 }
  0x1e   : > { %s387_s5 = sshll.u32 (!%p183_p9), %s189_s4, 4  ;;  %v241_v3 = vshrl.u32 (!%p183_p9), %v240_v2, 7 }
  0x1f   : > { %s191_s21 = scalar_lea.vmem (!%p183_p9), [#allocation2], %s387_s5 }
  0x20   : > { %v242_v4 = vsub.s32 (!%p183_p9), 0, %v241_v3  ;;  %v247_v5 = vsub.s32 (!%p183_p9), 1, %v241_v3  ;;  %v256_v6 = vsub.s32 (!%p183_p9), 2, %v241_v3  ;;  %v237_v7 = vld [vmem:[%s191_s21] sm:$0xff] (!%p183_p9)  ;;  %v238_v8 = vld [vmem:[%s191_s21 + $0x8] sm:$0xf] (!%p183_p9) }
  0x21   : > { %v269_v22 = vrot.slane (!%p183_p9), %v238_v8, 1 }
  0x24   : > { %s631_s12 = smov (!%p221_p10, %s492_s12), 1  ;;  %s633_s11 = smov (!%p223_p11, %s488_s11), 1 }
  0x25   : > { %s388_s6 = sshll.u32 %s631_s12, 1 }
  0x26   : > { %s226_s7 = sadd.s32 %s388_s6, %s633_s11 }
  0x27   : > { %s389_s8 = sshll.u32 %s226_s7, 2 }
  0x28   : > { %s228_s20 = scalar_lea.vmem %s616_s1, %s389_s8  ;;  %s236_s12 = scalar_lea.vmem %s617_s2, %s389_s8 }
  0x29   : > { %v239_v9 = vld [vmem:[%s228_s20] sm:$0x7] }
  0x2a   : > { %v243_v10 = vrot.slane %v239_v9, %v242_v4  ;;  %v248_v11 = vrot.slane %v239_v9, %v247_v5  ;;  %v257_v12 = vrot.slane %v239_v9, %v256_v6 }
  0x2c   : > { %v244_v13 = vmul.f32 %v243_v10, %v237_v7  ;;  %v249_v14 = vmul.f32 %v248_v11, %v237_v7  ;;  %v258_v15 = vmul.f32 %v257_v12, %v237_v7  ;;  %v259_v16 = vmul.f32 %v257_v12, %v238_v8 }
  0x2e   : > { %v251_v17 = vrot.slane %v249_v14, 3  ;;  %v263_v18 = vrot.slane %v258_v15, 6  ;;  %v264_v19 = vrot.slane %v259_v16, 6 }
  0x30   : > { %v253_v20 = vadd.f32 %v251_v17, %v244_v13  ;;  %v265_v21 = vsel %vm262_vm0, %v263_v18, %v264_v19 }
  0x32   : > { %v267_v23 = vadd.f32 %v265_v21, %v253_v20 }
  0x34   : > { %v271_v24 = vadd.f32 %v269_v22, %v267_v23 }
  0x36   : > { %272 = vst [vmem:[%s236_s12] sm:$0x7] %v271_v24 }
  0x37 PF: > { %s12_s15 = sadd.s32 1, %s504_s15   ;;  %s618_s9 = smov %s484_s10 }
  0x38   : > { %p9_p12 = scmp.ge.s32.totalorder %s12_s15, 6   ;;  %s619_s10 = smov %s572_s22 }
  0x39   : > { %s620_s11 = smov %s496_s13  ;;  %s621_s12 = smov %s500_s14 }
  0x3a   : > { %s622_s13 = smov %s625_s16  ;;  %s623_s14 = smov %s629_s17 }
  0x3b   :  { %11 = sbr.rel (!%p9_p12) target bundleno = 4 (0x4), region = 104 }

</bundles_post_ra>
